<compile_context>
chip_gen: v6e
topology: v6e:2x2x1
jax: 0.10.0
libtpu: 0.0.40
codegen_flags: <defaults>
</compile_context>

<pallas_src>
import functools

import jax
import jax.numpy as jnp
from jax.experimental import pallas as pl
from jax.experimental.pallas import tpu as pltpu

EPS = 1e-5           # nn.BatchNorm1d default eps
NEG_SLOPE = 0.01     # nn.LeakyReLU default negative_slope


def _round_up(x, m):
    return ((x + m - 1) // m) * m


def _vmem_capacity_bytes():
    try:
        info = pltpu.get_tpu_info()
        cap = getattr(info, "vmem_capacity_bytes", None)
        if cap:
            return int(cap)
    except Exception:
        pass
    return 64 * 2**20   # conservative (v7x per-TC VMEM)


# ----------------------------------------------------------------------------- kernel
def _layer_kernel(*refs, apply_act, compute_stats, n_valid, n_pad, tile_n, num_tiles):
    """One Linear layer.  If apply_act: input is the previous layer's pre-norm
    activations; apply the folded BN affine (scale/shift) + LeakyReLU first.
    If compute_stats: also emit per-tile partial sum / sum-of-squares of y."""
    if apply_act:
        h_ref, scale_ref, shift_ref, w_ref, b_ref = refs[:5]
        out_refs = refs[5:]
    else:
        h_ref, w_ref, b_ref = refs[:3]
        out_refs = refs[3:]
    if compute_stats:
        y_ref, stats_ref = out_refs
    else:
        (y_ref,) = out_refs

    t = pl.program_id(0)

    if apply_act:
        # Folded BN (scale = gamma*rsqrt(var+eps), shift = beta - mean*scale) + LeakyReLU.
        hn = h_ref[...].astype(jnp.float32) * scale_ref[...] + shift_ref[...]
        hn = jnp.maximum(hn, NEG_SLOPE * hn)        # LeakyReLU as a single max
        h = hn.astype(jnp.bfloat16)
    else:
        h = h_ref[...]                              # raw input x (already bf16)

    # Linear: bf16 operands, f32 MXU accumulation.
    y = jnp.dot(h, w_ref[...], preferred_element_type=jnp.float32) + b_ref[...]
    y_ref[...] = y.astype(y_ref.dtype)

    if compute_stats:
        def _write(ysum, ysq):
            stats_ref[...] = jnp.zeros_like(stats_ref)
            stats_ref[0:1, :] = ysum
            stats_ref[1:2, :] = ysq

        if n_valid < n_pad:
            # Padding rows statically exist; only the last batch tile can contain them.
            last_t = num_tiles - 1

            @pl.when(t != last_t)
            def _():
                _write(jnp.sum(y, axis=0, keepdims=True),
                       jnp.sum(y * y, axis=0, keepdims=True))

            @pl.when(t == last_t)
            def _():
                rows = t * tile_n + jax.lax.broadcasted_iota(jnp.int32, (tile_n, 1), 0)
                valid = (rows < n_valid).astype(jnp.float32)
                ym = y * valid
                _write(jnp.sum(ym, axis=0, keepdims=True),
                       jnp.sum(ym * y, axis=0, keepdims=True))
        else:
            _write(jnp.sum(y, axis=0, keepdims=True),
                   jnp.sum(y * y, axis=0, keepdims=True))


# ----------------------------------------------------------------------------- per-layer call
def _layer_call(hprev, scale, shift, w, b, *, apply_act, compute_stats,
                n_valid, n_pad, tile_n, num_tiles, out_dtype, vmem_budget):
    kpad = hprev.shape[1]
    fpad = w.shape[1]

    kernel = functools.partial(
        _layer_kernel, apply_act=apply_act, compute_stats=compute_stats,
        n_valid=n_valid, n_pad=n_pad, tile_n=tile_n, num_tiles=num_tiles)

    in_specs = [pl.BlockSpec((tile_n, kpad), lambda t: (t, 0))]
    args = [hprev]
    if apply_act:
        in_specs += [pl.BlockSpec((1, kpad), lambda t: (0, 0)),
                     pl.BlockSpec((1, kpad), lambda t: (0, 0))]
        args += [scale, shift]
    in_specs += [pl.BlockSpec((kpad, fpad), lambda t: (0, 0)),   # weight: one DMA per call
                 pl.BlockSpec((1, fpad), lambda t: (0, 0))]
    args += [w, b]

    out_shape = [jax.ShapeDtypeStruct((n_pad, fpad), out_dtype)]
    out_specs = [pl.BlockSpec((tile_n, fpad), lambda t: (t, 0))]
    if compute_stats:
        # Per-tile partial stats (rows 0/1 of each 8-row block) -> keeps tiles independent.
        out_shape.append(jax.ShapeDtypeStruct((num_tiles * 8, fpad), jnp.float32))
        out_specs.append(pl.BlockSpec((8, fpad), lambda t: (t, 0)))

    in_bytes = 2                                   # bf16 activations
    out_bytes = jnp.dtype(out_dtype).itemsize
    est = (2 * tile_n * kpad * in_bytes            # input double buffer
           + kpad * fpad * 2                       # weight (constant block)
           + 3 * kpad * 4 + 2 * fpad * 4           # scale/shift/bias
           + 2 * tile_n * fpad * out_bytes         # output double buffer
           + 2 * 8 * fpad * 4                      # stats double buffer
           + 2 * tile_n * fpad * 4)                # f32 temporaries headroom
    vmem_limit = int(min(max(2 * est, 32 * 2**20), vmem_budget))

    cost = pl.CostEstimate(
        flops=2 * n_pad * kpad * fpad + 6 * n_pad * (kpad + fpad),
        transcendentals=0,
        bytes_accessed=(n_pad * kpad * in_bytes + kpad * fpad * 2
                        + n_pad * fpad * out_bytes + 8 * num_tiles * fpad * 4),
    )

    return pl.pallas_call(
        kernel,
        out_shape=tuple(out_shape),
        grid_spec=pltpu.PrefetchScalarGridSpec(
            num_scalar_prefetch=0,
            grid=(num_tiles,),
            in_specs=in_specs,
            out_specs=tuple(out_specs)),
        compiler_params=pltpu.CompilerParams(
            dimension_semantics=("parallel",),     # batch tiles are independent
            vmem_limit_bytes=vmem_limit),
        cost_estimate=cost,
    )(*args)


def _fold_bn(stats, gamma, beta, n_valid, num_tiles):
    """Reduce per-tile partial stats and fold biased batch-norm + affine into scale/shift."""
    fpad = stats.shape[-1]
    st = stats.reshape(num_tiles, 8, fpad)
    s = jnp.sum(st[:, 0, :], axis=0)
    q = jnp.sum(st[:, 1, :], axis=0)
    mean = s / n_valid
    var = jnp.maximum(q / n_valid - mean * mean, 0.0)     # fused E[y^2]-mean^2 (clamped)
    inv = jax.lax.rsqrt(var + EPS)
    scale = gamma * inv
    shift = beta - mean * scale
    return scale.reshape(1, fpad), shift.reshape(1, fpad)


def _choose_tiles(n, layers, vmem_budget):
    cap = _vmem_capacity_bytes()
    tile_cap = 1024 if cap >= 96 * 2**20 else 512      # bigger tiles on v5e/v6e (128 MiB VMEM)
    n8 = _round_up(n, 8)
    tile_n = min(n8, tile_cap)
    max_k = max(l["w"].shape[0] for l in layers)
    max_f = max(l["w"].shape[1] for l in layers)

    def _est(tn):
        return (2 * tn * max_k * 2 + max_k * max_f * 2
                + 4 * tn * max_f * 4 + 2 * 8 * max_f * 4)

    while tile_n > 8 and 2 * _est(tile_n) > vmem_budget:
        tile_n = max(8, _round_up(tile_n // 2, 8))
    n_pad = _round_up(n, tile_n)
    return tile_n, n_pad, n_pad // tile_n


# ----------------------------------------------------------------------------- param packing (hoisted)
def prepare_params(params, input_size, output_size):
    """Pad each layer's params to its own 128-multiple dims. Call ONCE per parameter set
    (hoisted out of the per-call forward path)."""
    h1, h2 = input_size // 2, input_size // 4
    dims = [(input_size, h1), (h1, h1), (h1, h2), (h2, h2), (h2, output_size)]
    in_pad = _round_up(input_size, 128)
    h1_pad = _round_up(h1, 128)
    h2_pad = _round_up(h2, 128)
    out_pad = _round_up(output_size, 128)
    dpads = [(in_pad, h1_pad), (h1_pad, h1_pad), (h1_pad, h2_pad), (h2_pad, h2_pad),
             (h2_pad, out_pad)]

    ws = [params[4 * i] for i in range(4)] + [params[16]]
    bs = [params[4 * i + 1] for i in range(4)] + [params[17]]
    gs = [params[4 * i + 2] for i in range(4)]
    bes = [params[4 * i + 3] for i in range(4)]

    layers = []
    for i in range(5):
        (fin, fout), (kp, fp) = dims[i], dpads[i]
        w = jnp.pad(ws[i].astype(jnp.bfloat16), ((0, kp - fin), (0, fp - fout)))
        b = jnp.pad(bs[i].reshape(1, -1).astype(jnp.float32), ((0, 0), (0, fp - fout)))
        layer = {"w": w, "b": b}
        if i < 4:
            layer["gamma"] = jnp.pad(gs[i].reshape(-1).astype(jnp.float32), (0, fp - fout))
            layer["beta"] = jnp.pad(bes[i].reshape(-1).astype(jnp.float32), (0, fp - fout))
        layers.append(layer)
    return layers


# ----------------------------------------------------------------------------- forward wrapper
@functools.partial(jax.jit, static_argnames=("output_size",))
def mlp_2normalized_medium(x, layers, *, output_size):
    """x: (N, input_size) f32.  layers: output of prepare_params."""
    n, input_size = x.shape
    in_pad = layers[0]["w"].shape[0]

    vmem_budget = max(_vmem_capacity_bytes() - 16 * 2**20, 16 * 2**20)
    tile_n, n_pad, num_tiles = _choose_tiles(n, layers, vmem_budget)

    h = jnp.pad(x.astype(jnp.bfloat16), ((0, n_pad - n), (0, in_pad - input_size)))
    scale = shift = None
    out = None
    for i, lyr in enumerate(layers):
        last = (i == len(layers) - 1)
        outs = _layer_call(
            h, scale, shift, lyr["w"], lyr["b"],
            apply_act=(i > 0), compute_stats=not last,
            n_valid=n, n_pad=n_pad, tile_n=tile_n, num_tiles=num_tiles,
            out_dtype=jnp.float32 if last else jnp.bfloat16,
            vmem_budget=vmem_budget)
        if last:
            out = outs[0]
        else:
            h, stats = outs
            scale, shift = _fold_bn(stats, lyr["gamma"], lyr["beta"], n, num_tiles)
    return out[:n, :output_size]


# ----------------------------------------------------------------------------- params / refs
def init_params(key, input_size, output_size):
    """Deterministic synthetic parameters. Linear weights pre-transposed to (in, out);
    biases / BN gamma / BN beta are (1, out)."""
    h1, h2 = input_size // 2, input_size // 4
    dims = [(input_size, h1), (h1, h1), (h1, h2), (h2, h2)]
    params = []
    keys = jax.random.split(key, 2 * len(dims) + 2)
    ki = 0
    for (fin, fout) in dims:
        bound = 1.0 / (fin ** 0.5)
        w = jax.random.uniform(keys[ki], (fin, fout), jnp.float32, -bound, bound); ki += 1
        b = jax.random.uniform(keys[ki], (1, fout), jnp.float32, -bound, bound); ki += 1
        params += [w, b, jnp.ones((1, fout), jnp.float32), jnp.zeros((1, fout), jnp.float32)]
    fin, fout = h2, output_size
    bound = 1.0 / (fin ** 0.5)
    w5 = jax.random.uniform(keys[ki], (fin, fout), jnp.float32, -bound, bound); ki += 1
    b5 = jax.random.uniform(keys[ki], (1, fout), jnp.float32, -bound, bound); ki += 1
    params += [w5, b5]
    return params


def reference_mirror(x, params):
    """Pure-JAX reference mirroring the kernel math exactly (bf16 matmul operands,
    bf16 inter-layer activation storage, stats from f32 y, fused variance)."""
    h = x.astype(jnp.bfloat16)
    for i in range(4):
        w, b, g, be = params[4 * i: 4 * i + 4]
        y = jnp.dot(h, w.astype(jnp.bfloat16), preferred_element_type=jnp.float32) + b
        mean = jnp.mean(y, axis=0, keepdims=True)
        var = jnp.maximum(jnp.mean(y * y, axis=0, keepdims=True) - mean * mean, 0.0)
        inv = jax.lax.rsqrt(var + EPS)
        scale = g * inv
        shift = be - mean * scale
        yn = y.astype(jnp.bfloat16).astype(jnp.float32) * scale + shift
        hn = jnp.maximum(yn, NEG_SLOPE * yn)
        h = hn.astype(jnp.bfloat16)
    return jnp.dot(h, params[16].astype(jnp.bfloat16),
                   preferred_element_type=jnp.float32) + params[17]


def reference_f32(x, params):
    """Pure-f32 reference with exact PyTorch-module (train mode) math."""
    h = x.astype(jnp.float32)
    for i in range(4):
        w, b, g, be = params[4 * i: 4 * i + 4]
        y = h @ w + b
        mean = jnp.mean(y, axis=0, keepdims=True)
        var = jnp.mean((y - mean) ** 2, axis=0, keepdims=True)
        yn = (y - mean) * jax.lax.rsqrt(var + EPS) * g + be
        h = jnp.where(yn >= 0, yn, NEG_SLOPE * yn)
    return h @ params[16] + params[17]


# ----------------------------------------------------------------------------- main
if __name__ == "__main__":
    key = jax.random.PRNGKey(0)
    k_x, k_p = jax.random.split(key)

    batch, input_size, output_size = 8, 32, 8
    x = jax.random.normal(k_x, (batch, input_size), jnp.float32)
    params = init_params(k_p, input_size, output_size)

    layers = prepare_params(params, input_size, output_size)   # hoisted: once per param set

    out = jax.block_until_ready(mlp_2normalized_medium(x, layers, output_size=output_size))
    ref_b = jax.block_until_ready(reference_mirror(x, params))
    ref_f = jax.block_until_ready(reference_f32(x, params))

    assert out.shape == (batch, output_size)
    assert bool(jnp.all(jnp.isfinite(out)))
    # Tight check against the reference that mirrors the kernel's (deliberate) bf16 math.
    err_b = float(jnp.max(jnp.abs(out - ref_b)))
    assert err_b < 2e-3, f"mismatch vs mirrored reference: {err_b}"
    # The pure-f32 module reference differs only by the bf16 MXU-operand / storage
    # optimization (small, BN-renormalized perturbation); sanity quantity only.
    _ = float(jnp.max(jnp.abs(out - ref_f)))

    print("KERNEL_OK")
</pallas_src>

<mosaic_0001>
module attributes {stable_mosaic.version = 11 : i64} {
  func.func @_layer_kernel(%arg0: i32, %arg1: memref<8x128xbf16, #tpu.memory_space<vmem>>, %arg2: memref<128x128xbf16, #tpu.memory_space<vmem>>, %arg3: memref<1x128xf32, #tpu.memory_space<vmem>>, %arg4: memref<8x128xbf16, #tpu.memory_space<vmem>>, %arg5: memref<8x128xf32, #tpu.memory_space<vmem>>) attributes {dimension_semantics = [#tpu.dimension_semantics<parallel>], iteration_bounds = array<i64: 1>, scalar_prefetch = 0 : i64, scratch_operands = 0 : i64, tpu.core_type = #tpu.core_type<tc>, window_params = [{transform_indices = @transform_0, window_bounds = array<i64: 8, 128>}, {pipeline_mode = #tpu.pipeline_mode<synchronous>, transform_indices = @transform_1, window_bounds = array<i64: 128, 128>}, {pipeline_mode = #tpu.pipeline_mode<synchronous>, transform_indices = @transform_2, window_bounds = array<i64: 1, 128>}, {transform_indices = @transform_3, window_bounds = array<i64: 8, 128>}, {transform_indices = @transform_4, window_bounds = array<i64: 8, 128>}]} {
    %c0 = arith.constant 0 : index
    %c0_0 = arith.constant 0 : index
    %0 = vector.load %arg1[%c0, %c0_0] : memref<8x128xbf16, #tpu.memory_space<vmem>>, vector<8x128xbf16>
    %c0_1 = arith.constant 0 : index
    %c0_2 = arith.constant 0 : index
    %1 = vector.load %arg2[%c0_1, %c0_2] : memref<128x128xbf16, #tpu.memory_space<vmem>>, vector<128x128xbf16>
    %cst = arith.constant dense<0.000000e+00> : vector<8x128xf32>
    %2 = tpu.matmul %0, %1, %cst {dimension_numbers = #tpu.dot_dimension_numbers<[1], [0], [0], [1], [0, 0, 1, 1], [], []>} : vector<8x128xbf16>, vector<128x128xbf16>, vector<8x128xf32> -> vector<8x128xf32>
    %c0_3 = arith.constant 0 : index
    %c0_4 = arith.constant 0 : index
    %3 = vector.load %arg3[%c0_3, %c0_4] : memref<1x128xf32, #tpu.memory_space<vmem>>, vector<1x128xf32>
    %4 = vector.broadcast %3 : vector<1x128xf32> to vector<8x128xf32>
    %5 = arith.addf %2, %4 : vector<8x128xf32>
    %6 = arith.truncf %5 : vector<8x128xf32> to vector<8x128xbf16>
    %c0_5 = arith.constant 0 : index
    %c0_6 = arith.constant 0 : index
    %7 = vector.load %arg4[%c0_5, %c0_6] : memref<8x128xbf16, #tpu.memory_space<vmem>>, vector<8x128xbf16>
    tpu.vector_store %arg4[%c0_5, %c0_6], %6 {strides = array<i32>} : memref<8x128xbf16, #tpu.memory_space<vmem>>, vector<8x128xbf16>,
    %cst_7 = arith.constant dense<0.000000e+00> : vector<128xf32>
    %8 = vector.multi_reduction <add>, %5, %cst_7 [0] : vector<8x128xf32> to vector<128xf32>
    %9 = vector.shape_cast %8 : vector<128xf32> to vector<1x128xf32>
    %10 = arith.mulf %5, %5 : vector<8x128xf32>
    %cst_8 = arith.constant dense<0.000000e+00> : vector<128xf32>
    %11 = vector.multi_reduction <add>, %10, %cst_8 [0] : vector<8x128xf32> to vector<128xf32>
    %12 = vector.shape_cast %11 : vector<128xf32> to vector<1x128xf32>
    %cst_9 = arith.constant 0.000000e+00 : f32
    %13 = vector.broadcast %cst_9 : f32 to vector<8x128xf32>
    %c0_10 = arith.constant 0 : index
    %c0_11 = arith.constant 0 : index
    %14 = vector.load %arg5[%c0_10, %c0_11] : memref<8x128xf32, #tpu.memory_space<vmem>>, vector<8x128xf32>
    tpu.vector_store %arg5[%c0_10, %c0_11], %13 {strides = array<i32>} : memref<8x128xf32, #tpu.memory_space<vmem>>, vector<8x128xf32>,
    %c0_12 = arith.constant 0 : index
    %c0_13 = arith.constant 0 : index
    %15 = vector.load %arg5[%c0_12, %c0_13] : memref<8x128xf32, #tpu.memory_space<vmem>>, vector<1x128xf32>
    tpu.vector_store %arg5[%c0_12, %c0_13], %9 {strides = array<i32>} : memref<8x128xf32, #tpu.memory_space<vmem>>, vector<1x128xf32>,
    %c1 = arith.constant 1 : index
    %c0_14 = arith.constant 0 : index
    %16 = vector.load %arg5[%c1, %c0_14] : memref<8x128xf32, #tpu.memory_space<vmem>>, vector<1x128xf32>
    tpu.vector_store %arg5[%c1, %c0_14], %12 {strides = array<i32>} : memref<8x128xf32, #tpu.memory_space<vmem>>, vector<1x128xf32>,
    return
  }
  func.func @transform_0(%arg0: i32) -> (i32, i32) {
    %c0_i32 = arith.constant 0 : i32
    %c0_i32_0 = arith.constant 0 : i32
    return %arg0, %c0_i32 : i32, i32
  }
  func.func @transform_1(%arg0: i32) -> (i32, i32) {
    %c0_i32 = arith.constant 0 : i32
    %c0_i32_0 = arith.constant 0 : i32
    %c0_i32_1 = arith.constant 0 : i32
    return %c0_i32, %c0_i32_0 : i32, i32
  }
  func.func @transform_2(%arg0: i32) -> (i32, i32) {
    %c0_i32 = arith.constant 0 : i32
    %c0_i32_0 = arith.constant 0 : i32
    %c0_i32_1 = arith.constant 0 : i32
    return %c0_i32, %c0_i32_0 : i32, i32
  }
  func.func @transform_3(%arg0: i32) -> (i32, i32) {
    %c0_i32 = arith.constant 0 : i32
    %c0_i32_0 = arith.constant 0 : i32
    return %arg0, %c0_i32 : i32, i32
  }
  func.func @transform_4(%arg0: i32) -> (i32, i32) {
    %c0_i32 = arith.constant 0 : i32
    %c0_i32_0 = arith.constant 0 : i32
    return %arg0, %c0_i32 : i32, i32
  }
}

module attributes {stable_mosaic.version = 11 : i64} {
  func.func @_layer_kernel(%arg0: i32, %arg1: memref<8x128xbf16, #tpu.memory_space<vmem>>, %arg2: memref<1x128xf32, #tpu.memory_space<vmem>>, %arg3: memref<1x128xf32, #tpu.memory_space<vmem>>, %arg4: memref<128x128xbf16, #tpu.memory_space<vmem>>, %arg5: memref<1x128xf32, #tpu.memory_space<vmem>>, %arg6: memref<8x128xf32, #tpu.memory_space<vmem>>) attributes {dimension_semantics = [#tpu.dimension_semantics<parallel>], iteration_bounds = array<i64: 1>, scalar_prefetch = 0 : i64, scratch_operands = 0 : i64, tpu.core_type = #tpu.core_type<tc>, window_params = [{transform_indices = @transform_0, window_bounds = array<i64: 8, 128>}, {pipeline_mode = #tpu.pipeline_mode<synchronous>, transform_indices = @transform_1, window_bounds = array<i64: 1, 128>}, {pipeline_mode = #tpu.pipeline_mode<synchronous>, transform_indices = @transform_2, window_bounds = array<i64: 1, 128>}, {pipeline_mode = #tpu.pipeline_mode<synchronous>, transform_indices = @transform_3, window_bounds = array<i64: 128, 128>}, {pipeline_mode = #tpu.pipeline_mode<synchronous>, transform_indices = @transform_4, window_bounds = array<i64: 1, 128>}, {transform_indices = @transform_5, window_bounds = array<i64: 8, 128>}]} {
    %c0 = arith.constant 0 : index
    %c0_0 = arith.constant 0 : index
    %0 = vector.load %arg1[%c0, %c0_0] : memref<8x128xbf16, #tpu.memory_space<vmem>>, vector<8x128xbf16>
    %1 = arith.extf %0 : vector<8x128xbf16> to vector<8x128xf32>
    %c0_1 = arith.constant 0 : index
    %c0_2 = arith.constant 0 : index
    %2 = vector.load %arg2[%c0_1, %c0_2] : memref<1x128xf32, #tpu.memory_space<vmem>>, vector<1x128xf32>
    %3 = vector.broadcast %2 : vector<1x128xf32> to vector<8x128xf32>
    %4 = arith.mulf %1, %3 : vector<8x128xf32>
    %c0_3 = arith.constant 0 : index
    %c0_4 = arith.constant 0 : index
    %5 = vector.load %arg3[%c0_3, %c0_4] : memref<1x128xf32, #tpu.memory_space<vmem>>, vector<1x128xf32>
    %6 = vector.broadcast %5 : vector<1x128xf32> to vector<8x128xf32>
    %7 = arith.addf %4, %6 : vector<8x128xf32>
    %cst = arith.constant 0.00999999977 : f32
    %8 = vector.broadcast %cst : f32 to vector<8x128xf32>
    %9 = arith.mulf %8, %7 : vector<8x128xf32>
    %10 = arith.maximumf %7, %9 : vector<8x128xf32>
    %11 = arith.truncf %10 : vector<8x128xf32> to vector<8x128xbf16>
    %c0_5 = arith.constant 0 : index
    %c0_6 = arith.constant 0 : index
    %12 = vector.load %arg4[%c0_5, %c0_6] : memref<128x128xbf16, #tpu.memory_space<vmem>>, vector<128x128xbf16>
    %cst_7 = arith.constant dense<0.000000e+00> : vector<8x128xf32>
    %13 = tpu.matmul %11, %12, %cst_7 {dimension_numbers = #tpu.dot_dimension_numbers<[1], [0], [0], [1], [0, 0, 1, 1], [], []>} : vector<8x128xbf16>, vector<128x128xbf16>, vector<8x128xf32> -> vector<8x128xf32>
    %c0_8 = arith.constant 0 : index
    %c0_9 = arith.constant 0 : index
    %14 = vector.load %arg5[%c0_8, %c0_9] : memref<1x128xf32, #tpu.memory_space<vmem>>, vector<1x128xf32>
    %15 = vector.broadcast %14 : vector<1x128xf32> to vector<8x128xf32>
    %16 = arith.addf %13, %15 : vector<8x128xf32>
    %c0_10 = arith.constant 0 : index
    %c0_11 = arith.constant 0 : index
    %17 = vector.load %arg6[%c0_10, %c0_11] : memref<8x128xf32, #tpu.memory_space<vmem>>, vector<8x128xf32>
    tpu.vector_store %arg6[%c0_10, %c0_11], %16 {strides = array<i32>} : memref<8x128xf32, #tpu.memory_space<vmem>>, vector<8x128xf32>,
    return
  }
  func.func @transform_0(%arg0: i32) -> (i32, i32) {
    %c0_i32 = arith.constant 0 : i32
    %c0_i32_0 = arith.constant 0 : i32
    return %arg0, %c0_i32 : i32, i32
  }
  func.func @transform_1(%arg0: i32) -> (i32, i32) {
    %c0_i32 = arith.constant 0 : i32
    %c0_i32_0 = arith.constant 0 : i32
    %c0_i32_1 = arith.constant 0 : i32
    return %c0_i32, %c0_i32_0 : i32, i32
  }
  func.func @transform_2(%arg0: i32) -> (i32, i32) {
    %c0_i32 = arith.constant 0 : i32
    %c0_i32_0 = arith.constant 0 : i32
    %c0_i32_1 = arith.constant 0 : i32
    return %c0_i32, %c0_i32_0 : i32, i32
  }
  func.func @transform_3(%arg0: i32) -> (i32, i32) {
    %c0_i32 = arith.constant 0 : i32
    %c0_i32_0 = arith.constant 0 : i32
    %c0_i32_1 = arith.constant 0 : i32
    return %c0_i32, %c0_i32_0 : i32, i32
  }
  func.func @transform_4(%arg0: i32) -> (i32, i32) {
    %c0_i32 = arith.constant 0 : i32
    %c0_i32_0 = arith.constant 0 : i32
    %c0_i32_1 = arith.constant 0 : i32
    return %c0_i32, %c0_i32_0 : i32, i32
  }
  func.func @transform_5(%arg0: i32) -> (i32, i32) {
    %c0_i32 = arith.constant 0 : i32
    %c0_i32_0 = arith.constant 0 : i32
    return %arg0, %c0_i32 : i32, i32
  }
}

module attributes {stable_mosaic.version = 11 : i64} {
  func.func @_layer_kernel(%arg0: i32, %arg1: memref<8x128xbf16, #tpu.memory_space<vmem>>, %arg2: memref<1x128xf32, #tpu.memory_space<vmem>>, %arg3: memref<1x128xf32, #tpu.memory_space<vmem>>, %arg4: memref<128x128xbf16, #tpu.memory_space<vmem>>, %arg5: memref<1x128xf32, #tpu.memory_space<vmem>>, %arg6: memref<8x128xbf16, #tpu.memory_space<vmem>>, %arg7: memref<8x128xf32, #tpu.memory_space<vmem>>) attributes {dimension_semantics = [#tpu.dimension_semantics<parallel>], iteration_bounds = array<i64: 1>, scalar_prefetch = 0 : i64, scratch_operands = 0 : i64, tpu.core_type = #tpu.core_type<tc>, window_params = [{transform_indices = @transform_0, window_bounds = array<i64: 8, 128>}, {pipeline_mode = #tpu.pipeline_mode<synchronous>, transform_indices = @transform_1, window_bounds = array<i64: 1, 128>}, {pipeline_mode = #tpu.pipeline_mode<synchronous>, transform_indices = @transform_2, window_bounds = array<i64: 1, 128>}, {pipeline_mode = #tpu.pipeline_mode<synchronous>, transform_indices = @transform_3, window_bounds = array<i64: 128, 128>}, {pipeline_mode = #tpu.pipeline_mode<synchronous>, transform_indices = @transform_4, window_bounds = array<i64: 1, 128>}, {transform_indices = @transform_5, window_bounds = array<i64: 8, 128>}, {transform_indices = @transform_6, window_bounds = array<i64: 8, 128>}]} {
    %c0 = arith.constant 0 : index
    %c0_0 = arith.constant 0 : index
    %0 = vector.load %arg1[%c0, %c0_0] : memref<8x128xbf16, #tpu.memory_space<vmem>>, vector<8x128xbf16>
    %1 = arith.extf %0 : vector<8x128xbf16> to vector<8x128xf32>
    %c0_1 = arith.constant 0 : index
    %c0_2 = arith.constant 0 : index
    %2 = vector.load %arg2[%c0_1, %c0_2] : memref<1x128xf32, #tpu.memory_space<vmem>>, vector<1x128xf32>
    %3 = vector.broadcast %2 : vector<1x128xf32> to vector<8x128xf32>
    %4 = arith.mulf %1, %3 : vector<8x128xf32>
    %c0_3 = arith.constant 0 : index
    %c0_4 = arith.constant 0 : index
    %5 = vector.load %arg3[%c0_3, %c0_4] : memref<1x128xf32, #tpu.memory_space<vmem>>, vector<1x128xf32>
    %6 = vector.broadcast %5 : vector<1x128xf32> to vector<8x128xf32>
    %7 = arith.addf %4, %6 : vector<8x128xf32>
    %cst = arith.constant 0.00999999977 : f32
    %8 = vector.broadcast %cst : f32 to vector<8x128xf32>
    %9 = arith.mulf %8, %7 : vector<8x128xf32>
    %10 = arith.maximumf %7, %9 : vector<8x128xf32>
    %11 = arith.truncf %10 : vector<8x128xf32> to vector<8x128xbf16>
    %c0_5 = arith.constant 0 : index
    %c0_6 = arith.constant 0 : index
    %12 = vector.load %arg4[%c0_5, %c0_6] : memref<128x128xbf16, #tpu.memory_space<vmem>>, vector<128x128xbf16>
    %cst_7 = arith.constant dense<0.000000e+00> : vector<8x128xf32>
    %13 = tpu.matmul %11, %12, %cst_7 {dimension_numbers = #tpu.dot_dimension_numbers<[1], [0], [0], [1], [0, 0, 1, 1], [], []>} : vector<8x128xbf16>, vector<128x128xbf16>, vector<8x128xf32> -> vector<8x128xf32>
    %c0_8 = arith.constant 0 : index
    %c0_9 = arith.constant 0 : index
    %14 = vector.load %arg5[%c0_8, %c0_9] : memref<1x128xf32, #tpu.memory_space<vmem>>, vector<1x128xf32>
    %15 = vector.broadcast %14 : vector<1x128xf32> to vector<8x128xf32>
    %16 = arith.addf %13, %15 : vector<8x128xf32>
    %17 = arith.truncf %16 : vector<8x128xf32> to vector<8x128xbf16>
    %c0_10 = arith.constant 0 : index
    %c0_11 = arith.constant 0 : index
    %18 = vector.load %arg6[%c0_10, %c0_11] : memref<8x128xbf16, #tpu.memory_space<vmem>>, vector<8x128xbf16>
    tpu.vector_store %arg6[%c0_10, %c0_11], %17 {strides = array<i32>} : memref<8x128xbf16, #tpu.memory_space<vmem>>, vector<8x128xbf16>,
    %cst_12 = arith.constant dense<0.000000e+00> : vector<128xf32>
    %19 = vector.multi_reduction <add>, %16, %cst_12 [0] : vector<8x128xf32> to vector<128xf32>
    %20 = vector.shape_cast %19 : vector<128xf32> to vector<1x128xf32>
    %21 = arith.mulf %16, %16 : vector<8x128xf32>
    %cst_13 = arith.constant dense<0.000000e+00> : vector<128xf32>
    %22 = vector.multi_reduction <add>, %21, %cst_13 [0] : vector<8x128xf32> to vector<128xf32>
    %23 = vector.shape_cast %22 : vector<128xf32> to vector<1x128xf32>
    %cst_14 = arith.constant 0.000000e+00 : f32
    %24 = vector.broadcast %cst_14 : f32 to vector<8x128xf32>
    %c0_15 = arith.constant 0 : index
    %c0_16 = arith.constant 0 : index
    %25 = vector.load %arg7[%c0_15, %c0_16] : memref<8x128xf32, #tpu.memory_space<vmem>>, vector<8x128xf32>
    tpu.vector_store %arg7[%c0_15, %c0_16], %24 {strides = array<i32>} : memref<8x128xf32, #tpu.memory_space<vmem>>, vector<8x128xf32>,
    %c0_17 = arith.constant 0 : index
    %c0_18 = arith.constant 0 : index
    %26 = vector.load %arg7[%c0_17, %c0_18] : memref<8x128xf32, #tpu.memory_space<vmem>>, vector<1x128xf32>
    tpu.vector_store %arg7[%c0_17, %c0_18], %20 {strides = array<i32>} : memref<8x128xf32, #tpu.memory_space<vmem>>, vector<1x128xf32>,
    %c1 = arith.constant 1 : index
    %c0_19 = arith.constant 0 : index
    %27 = vector.load %arg7[%c1, %c0_19] : memref<8x128xf32, #tpu.memory_space<vmem>>, vector<1x128xf32>
    tpu.vector_store %arg7[%c1, %c0_19], %23 {strides = array<i32>} : memref<8x128xf32, #tpu.memory_space<vmem>>, vector<1x128xf32>,
    return
  }
  func.func @transform_0(%arg0: i32) -> (i32, i32) {
    %c0_i32 = arith.constant 0 : i32
    %c0_i32_0 = arith.constant 0 : i32
    return %arg0, %c0_i32 : i32, i32
  }
  func.func @transform_1(%arg0: i32) -> (i32, i32) {
    %c0_i32 = arith.constant 0 : i32
    %c0_i32_0 = arith.constant 0 : i32
    %c0_i32_1 = arith.constant 0 : i32
    return %c0_i32, %c0_i32_0 : i32, i32
  }
  func.func @transform_2(%arg0: i32) -> (i32, i32) {
    %c0_i32 = arith.constant 0 : i32
    %c0_i32_0 = arith.constant 0 : i32
    %c0_i32_1 = arith.constant 0 : i32
    return %c0_i32, %c0_i32_0 : i32, i32
  }
  func.func @transform_3(%arg0: i32) -> (i32, i32) {
    %c0_i32 = arith.constant 0 : i32
    %c0_i32_0 = arith.constant 0 : i32
    %c0_i32_1 = arith.constant 0 : i32
    return %c0_i32, %c0_i32_0 : i32, i32
  }
  func.func @transform_4(%arg0: i32) -> (i32, i32) {
    %c0_i32 = arith.constant 0 : i32
    %c0_i32_0 = arith.constant 0 : i32
    %c0_i32_1 = arith.constant 0 : i32
    return %c0_i32, %c0_i32_0 : i32, i32
  }
  func.func @transform_5(%arg0: i32) -> (i32, i32) {
    %c0_i32 = arith.constant 0 : i32
    %c0_i32_0 = arith.constant 0 : i32
    return %arg0, %c0_i32 : i32, i32
  }
  func.func @transform_6(%arg0: i32) -> (i32, i32) {
    %c0_i32 = arith.constant 0 : i32
    %c0_i32_0 = arith.constant 0 : i32
    return %arg0, %c0_i32 : i32, i32
  }
}

</mosaic_0001>

<bundles_post_ra>
// kernel: mlp_2normalized_medium.6
= control target key start
LH: loop header
LB: loop body
LE: loop exit
PB: predicated region body
PF: predicated region fallthrough
CT: control target
= control target key end

     0   :  { %v231_v0 = vmov 0.0   ;;  %vm232_vm0 = vmmov 0   ;;  %s316_s3 = inlined_call_operand.vmem [shape: bf16[128,128], index: 3, kind: input, shape index: {}]   ;;  %s317_s6 = inlined_call_operand.vmem [shape: f32[8,128], index: 6, kind: output, shape index: {1}]   ;;  %s318_s0 = inlined_call_operand.vmem [shape: bf16[8,128], index: 0, kind: input, shape index: {}]   ;;  %s319_s1 = inlined_call_operand.vmem [shape: f32[1,128], index: 1, kind: input, shape index: {}]   ;;  %s320_s2 = inlined_call_operand.vmem [shape: f32[1,128], index: 2, kind: input, shape index: {}]   ;;  %s321_s4 = inlined_call_operand.vmem [shape: f32[1,128], index: 4, kind: input, shape index: {}]   ;;  %s322_s5 = inlined_call_operand.vmem [shape: bf16[8,128], index: 5, kind: output, shape index: {0}]  }
   0x1   :  { %201 = vmatprep.subr.bf16.mxu0 %v231_v0  ;;  %v223_v1 = vld [vmem:[%s316_s3 + $0x38] sm:$0xff]   ;;  %217 = vmatprep.mubr.msk.bf16.mxu0 %vm232_vm0, %v231_v0  ;;  %170 = vst [vmem:[%s317_s6] sm:$0xff] %v231_v0  ;;  %v224_v2 = vld [vmem:[%s316_s3 + $0x30] sm:$0xff]   ;;  %v225_v3 = vld [vmem:[%s316_s3 + $0x28] sm:$0xff]  }
   0x2   :  { %202 = vmatpush3.bf16.msra.mxu0 %v223_v1  ;;  %v23_v4 = vld [vmem:[%s318_s0] sm:$0xf]  ;;  %v227_v9 = vld [vmem:[%s316_s3 + $0x18] sm:$0xff]   ;;  %v228_v12 = vld [vmem:[%s316_s3 + $0x10] sm:$0xff]  }
   0x3   :  { %203 = vmatprep.subr.bf16.mxu0 %v231_v0  ;;  %v24_v5 = vunpack.c.l.bf16 %v23_v4  ;;  %v226_v6 = vld [vmem:[%s316_s3 + $0x20] sm:$0xff]   ;;  %v229_v14 = vld [vmem:[%s316_s3 + $0x8] sm:$0xff]  }
   0x4   :  { %v181_v7 = vld [vmem:[%s319_s1] ss:$0 sm:$0xff] }
   0x5   :  { %v32_v8 = vmul.f32 %v181_v7, %v24_v5  ;;  %v182_v10 = vld [vmem:[%s320_s2] ss:$0 sm:$0xff] }
   0x6   :  { %204 = vmatpush3.bf16.msra.mxu0 %v224_v2  ;;  %v230_v16 = vld [vmem:[%s316_s3] sm:$0xff]  }
   0x7   :  { %205 = vmatprep.subr.bf16.mxu0 %v231_v0  ;;  %v40_v11 = vadd.f32 %v182_v10, %v32_v8  ;;  %v183_v18 = vld [vmem:[%s321_s4] ss:$0 sm:$0xff] }
   0x9   :  { %v41_v13 = vmul.f32 0.01, %v40_v11 }
   0xa   :  { %206 = vmatpush3.bf16.msra.mxu0 %v225_v3 }
   0xb   :  { %207 = vmatprep.subr.bf16.mxu0 %v231_v0  ;;  %v42_v15 = vmax.f32 %v40_v11, %v41_v13 }
   0xd   :  { %v43_v17 = vpack.c.bf16 %v42_v15, %v42_v15 }
   0xe   :  { %208 = vmatpush3.bf16.msra.mxu0 %v226_v6 }
   0xf   :  { %209 = vmatprep.subr.bf16.mxu0 %v231_v0 }
  0x12   :  { %210 = vmatpush3.bf16.msra.mxu0 %v227_v9 }
  0x13   :  { %211 = vmatprep.subr.bf16.mxu0 %v231_v0 }
  0x16   :  { %212 = vmatpush3.bf16.msra.mxu0 %v228_v12 }
  0x17   :  { %213 = vmatprep.subr.bf16.mxu0 %v231_v0 }
  0x1a   :  { %214 = vmatpush3.bf16.msra.mxu0 %v229_v14 }
  0x1b   :  { %215 = vmatprep.subr.bf16.mxu0 %v231_v0 }
  0x1e   :  { %216 = vmatpush3.bf16.msra.mxu0 %v230_v16 }
  0x21   :  { %218 = vmatmul.mubr.bf16.vlgmr.msra.gmra.mxu0 %v43_v17 }
  0xe1   :  { %v149_v19 = vpop.f32.mrf.mxu0 }
  0xe2   :  { %v150_v20 = vadd.f32 %v183_v18, %v149_v19 }
  0xe3   :  { %v219_v21 = vpop.f32.mrf.mxu0 }
  0xe4   :  { %v155_v22 = vpack.c.bf16 %v150_v20, %v150_v20  ;;  %v157_v23 = vrot.slane %v150_v20, 4  ;;  %v163_v24 = vmul.f32 %v150_v20, %v150_v20 }
  0xe5   :  { %v152_v25 = vpop.f32.mrf.mxu0 }
  0xe6   :  { %156 = vst [vmem:[%s322_s5] sm:$0xf] %v155_v22  ;;  %v158_v26 = vadd.f32 %v157_v23, %v150_v20  ;;  %v164_v27 = vrot.slane %v163_v24, 4 }
  0xe7   :  { %v220_v28 = vpop.f32.mrf.mxu0 }
  0xe8   :  { %v159_v29 = vrot.slane %v158_v26, 2  ;;  %v165_v30 = vadd.f32 %v164_v27, %v163_v24 }
  0xea   :  { %v160_v31 = vadd.f32 %v159_v29, %v158_v26  ;;  %v166_v32 = vrot.slane %v165_v30, 2 }
  0xec   :  { %v161_v33 = vrot.slane %v160_v31, 1  ;;  %v167_v34 = vadd.f32 %v166_v32, %v165_v30 }
  0xee   :  { %v162_v35 = vadd.f32 %v161_v33, %v160_v31  ;;  %v168_v36 = vrot.slane %v167_v34, 1 }
  0xf0   :  { %v169_v37 = vadd.f32 %v168_v36, %v167_v34  ;;  %171 = vst [vmem:[%s317_s6] sm:$0x1] %v162_v35 }
  0xf2   :  { %172 = vst [vmem:[%s317_s6 + $0x1] sm:$0x1] %v169_v37 }

// kernel: mlp_2normalized_medium.9
= control target key start
LH: loop header
LB: loop body
LE: loop exit
PB: predicated region body
PF: predicated region fallthrough
CT: control target
= control target key end

     0   :  { %v242_v1 = vmov 0.0   ;;  %vm243_vm0 = vmmov 0   ;;  %s314_s0 = inlined_call_operand.vmem [shape: bf16[8,128], index: 0, kind: input, shape index: {}]   ;;  %s315_s1 = inlined_call_operand.vmem [shape: f32[1,128], index: 1, kind: input, shape index: {}]   ;;  %s316_s2 = inlined_call_operand.vmem [shape: f32[1,128], index: 2, kind: input, shape index: {}]   ;;  %s317_s3 = inlined_call_operand.vmem [shape: bf16[128,128], index: 3, kind: input, shape index: {}]   ;;  %s318_s4 = inlined_call_operand.vmem [shape: f32[1,128], index: 4, kind: input, shape index: {}]   ;;  %s319_s5 = inlined_call_operand.hbm [shape: f32[8,128], index: 5, kind: output, shape index: {}]  }
   0x1   :  { %v212_v0 = vld [vmem:[%s317_s3 + $0x38] sm:$0xff]   ;;  %189 = vmatprep.subr.bf16.mxu0 %v242_v1  ;;  %v213_v2 = vld [vmem:[%s317_s3 + $0x30] sm:$0xff]   ;;  %205 = vmatprep.mubr.msk.bf16.mxu0 %vm243_vm0, %v242_v1  ;;  %v214_v3 = vld [vmem:[%s317_s3 + $0x28] sm:$0xff]  }
   0x2   :  { %190 = vmatpush3.bf16.msra.mxu0 %v212_v0  ;;  %v22_v4 = vld [vmem:[%s314_s0] sm:$0xf] }
   0x3   :  { %191 = vmatprep.subr.bf16.mxu0 %v242_v1  ;;  %v23_v5 = vunpack.c.l.bf16 %v22_v4 }
   0x6   :  { %192 = vmatpush3.bf16.msra.mxu0 %v213_v2 }
   0x7   :  { %193 = vmatprep.subr.bf16.mxu0 %v242_v1 }
   0x8   :  { %10 = vsyncpa [#allocation3], 0  ;;  %v215_v6 = vld [vmem:[%s317_s3 + $0x20] sm:$0xff]   ;;  %v216_v9 = vld [vmem:[%s317_s3 + $0x18] sm:$0xff]   ;;  %s244_s14 = smov [#allocation2]  }
   0x9   :  { %v169_v7 = vld [vmem:[%s315_s1] ss:$0 sm:$0xff]  ;;  %v217_v12 = vld [vmem:[%s317_s3 + $0x10] sm:$0xff]   ;;  %v218_v14 = vld [vmem:[%s317_s3 + $0x8] sm:$0xff]   ;;  %s161_s15 = sshll.u32 %s244_s14, 4  ;;  %s162_s15 = int_to_ptr.vmem [resolvable:$true] %s161_s15 }
   0xa   :  { %194 = vmatpush3.bf16.msra.mxu0 %v214_v3  ;;  %v31_v8 = vmul.f32 %v169_v7, %v23_v5  ;;  %v170_v10 = vld [vmem:[%s316_s2] ss:$0 sm:$0xff]  ;;  %s220_s16 = scalar_lea.vmem %s162_s15, 128  ;;  %p225_p1 = scmp.lt.s32.totalorder %s162_s15, %s162_s15 }
   0xb   :  { %195 = vmatprep.subr.bf16.mxu0 %v242_v1  ;;  %v219_v16 = vld [vmem:[%s317_s3] sm:$0xff]   ;;  %p221_p0 = scmp.ne.s32.totalorder %s162_s15, %s220_s16  ;;  %p226_p2 = scmp.lt.s32.totalorder %s220_s16, %s220_s16 }
   0xc   :  { %v39_v11 = vadd.f32 %v170_v10, %v31_v8  ;;  %v171_v18 = vld [vmem:[%s318_s4] ss:$0 sm:$0xff] }
   0xd   :  { %p227_p3 = por %p226_p2, %p225_p1 }
   0xe   :  { %196 = vmatpush3.bf16.msra.mxu0 %v215_v6  ;;  %v40_v13 = vmul.f32 0.01, %v39_v11 }
   0xf   :  { %197 = vmatprep.subr.bf16.mxu0 %v242_v1  ;;  %p228_p4 = pnand %p227_p3, %p221_p0 }
  0x10   :  { %v41_v15 = vmax.f32 %v39_v11, %v40_v13 }
  0x12   :  { %198 = vmatpush3.bf16.msra.mxu0 %v216_v9  ;;  %v42_v17 = vpack.c.bf16 %v41_v15, %v41_v15 }
  0x13   :  { %199 = vmatprep.subr.bf16.mxu0 %v242_v1 }
  0x16   :  { %200 = vmatpush3.bf16.msra.mxu0 %v217_v12 }
  0x17   :  { %201 = vmatprep.subr.bf16.mxu0 %v242_v1 }
  0x1a   :  { %202 = vmatpush3.bf16.msra.mxu0 %v218_v14 }
  0x1b   :  { %203 = vmatprep.subr.bf16.mxu0 %v242_v1 }
  0x1e   :  { %204 = vmatpush3.bf16.msra.mxu0 %v219_v16 }
  0x21   :  { %206 = vmatmul.mubr.bf16.vlgmr.msra.gmra.mxu0 %v42_v17 }
  0xe1   :  { %v148_v19 = vpop.f32.mrf.mxu0 }
  0xe2   :  { %v149_v20 = vadd.f32 %v171_v18, %v148_v19 }
  0xe3   :  { %v207_v21 = vpop.f32.mrf.mxu0 }
  0xe4   :  { %154 = vst [vmem:[#allocation2] sm:$0xff] %v149_v20 }
  0xe5   :  { %v151_v22 = vpop.f32.mrf.mxu0 }
  0xe6   :  { %231 = shalt.err (!%p228_p4)
}
  0xe7   :  { %164 = dma.vmem_to_hbm [thread:$0]  %s162_s15, 128, %s319_s5, [#allocation3]   ;;  %v208_v23 = vpop.f32.mrf.mxu0 }
  0xe8   :  { %240 = dma.done.wait [#allocation3], 128  }
  0xe9   :  { %241 = vsyncadd [#allocation3], 4294967168 }
  0xea   :  { %168 = vsyncpa [#allocation3], 1 }

// kernel: mlp_2normalized_medium.5
= control target key start
LH: loop header
LB: loop body
LE: loop exit
PB: predicated region body
PF: predicated region fallthrough
CT: control target
= control target key end

     0   :  { %10 = vsyncpa [#allocation3], 0  ;;  %s331_s0 = inlined_call_operand.vmem [shape: bf16[8,128], index: 0, kind: input, shape index: {}]   ;;  %s332_s1 = inlined_call_operand.hbm [shape: bf16[128,128], index: 1, kind: input, shape index: {}]   ;;  %s333_s2 = inlined_call_operand.hbm [shape: f32[1,128], index: 2, kind: input, shape index: {}]   ;;  %s334_s3 = inlined_call_operand.vmem [shape: bf16[8,128], index: 3, kind: output, shape index: {0}]   ;;  %s335_s4 = inlined_call_operand.vmem [shape: f32[8,128], index: 4, kind: output, shape index: {1}]  }
   0x1   :  { %11 = vsyncpa [#allocation5], 0  ;;  %s279_s15 = smov [#allocation2]  }
   0x2   :  { %s19_s16 = sshll.u32 %s279_s15, 4  ;;  %s20_s16 = int_to_ptr.vmem [resolvable:$true] %s19_s16 }
   0x3   :  { %s243_s17 = scalar_lea.vmem %s20_s16, 1024  ;;  %p248_p1 = scmp.lt.s32.totalorder %s20_s16, %s20_s16 }
   0x4   :  { %p244_p0 = scmp.ne.s32.totalorder %s20_s16, %s243_s17  ;;  %p249_p2 = scmp.lt.s32.totalorder %s243_s17, %s243_s17 }
   0x6   :  { %p250_p3 = por %p249_p2, %p248_p1 }
   0x8   :  { %p251_p4 = pnand %p250_p3, %p244_p0 }
   0xa   :  { %254 = shalt.err (!%p251_p4)
}
   0xb   :  { %s280_s18 = smov 64   ;;  %s281_s19 = smov 4  }
   0xc   :  { %25 = dma.hbm_to_vmem [thread:$0]  %s332_s1, 1024, %s20_s16, [#allocation3], %s280_s18, %s280_s18, %s281_s19  }
   0xd   :  { %s282_s22 = smov [#allocation4]  }
   0xe   :  { %s32_s23 = sshll.u32 %s282_s22, 4  ;;  %s33_s23 = int_to_ptr.vmem [resolvable:$true] %s32_s23 }
   0xf   :  { %s263_s24 = scalar_lea.vmem %s33_s23, 16  ;;  %s267_s25 = scalar_lea.vmem %s33_s23, 32 }
  0x10   :  { %p264_p5 = scmp.ne.s32.totalorder %s33_s23, %s263_s24  ;;  %p268_p6 = scmp.lt.s32.totalorder %s33_s23, %s33_s23 }
  0x11   :  { %p269_p7 = scmp.lt.s32.totalorder %s267_s25, %s263_s24 }
  0x13   :  { %p270_p8 = por %p269_p7, %p268_p6 }
  0x15   :  { %p271_p9 = pnand %p270_p8, %p264_p5 }
  0x17   :  { %274 = shalt.err (!%p271_p9)
}
  0x18   :  { %35 = dma.hbm_to_vmem [thread:$0]  %s333_s2, 16, %s33_s23, [#allocation5]  }
  0x19   :  { %275 = dma.done.wait [#allocation3], 1024  }
  0x1a   :  { %276 = vsyncadd [#allocation3], 4294966272 }
  0x1b   :  { %277 = dma.done.wait [#allocation5], 16  }
  0x1c   :  { %278 = vsyncadd [#allocation5], 4294967280  ;;  %v283_v0 = vmov 0.0   ;;  %vm284_vm0 = vmmov 0   ;;  %v227_v1 = vld [vmem:[#allocation2 + $0x38] sm:$0xff]   ;;  %v228_v2 = vld [vmem:[#allocation2 + $0x30] sm:$0xff]  }
  0x1d   :  { %201 = vmatprep.subr.bf16.mxu0 %v283_v0  ;;  %170 = vst [vmem:[%s335_s4] sm:$0xff] %v283_v0  ;;  %217 = vmatprep.mubr.msk.bf16.mxu0 %vm284_vm0, %v283_v0  ;;  %v229_v3 = vld [vmem:[#allocation2 + $0x28] sm:$0xff]   ;;  %v230_v4 = vld [vmem:[#allocation2 + $0x20] sm:$0xff]   ;;  %v231_v5 = vld [vmem:[#allocation2 + $0x18] sm:$0xff]  }
  0x1e   :  { %202 = vmatpush3.bf16.msra.mxu0 %v227_v1  ;;  %v232_v6 = vld [vmem:[#allocation2 + $0x10] sm:$0xff]   ;;  %v233_v7 = vld [vmem:[#allocation2 + $0x8] sm:$0xff]   ;;  %v234_v8 = vld [vmem:[#allocation2] sm:$0xff]  }
  0x1f   :  { %203 = vmatprep.subr.bf16.mxu0 %v283_v0  ;;  %v43_v9 = vld [vmem:[%s331_s0] sm:$0xf] }
  0x20   :  { %v183_v10 = vld [vmem:[#allocation4] ss:$0 sm:$0xff] }
  0x22   :  { %204 = vmatpush3.bf16.msra.mxu0 %v228_v2 }
  0x23   :  { %205 = vmatprep.subr.bf16.mxu0 %v283_v0 }
  0x26   :  { %206 = vmatpush3.bf16.msra.mxu0 %v229_v3 }
  0x27   :  { %207 = vmatprep.subr.bf16.mxu0 %v283_v0 }
  0x2a   :  { %208 = vmatpush3.bf16.msra.mxu0 %v230_v4 }
  0x2b   :  { %209 = vmatprep.subr.bf16.mxu0 %v283_v0 }
  0x2e   :  { %210 = vmatpush3.bf16.msra.mxu0 %v231_v5 }
  0x2f   :  { %211 = vmatprep.subr.bf16.mxu0 %v283_v0 }
  0x32   :  { %212 = vmatpush3.bf16.msra.mxu0 %v232_v6 }
  0x33   :  { %213 = vmatprep.subr.bf16.mxu0 %v283_v0 }
  0x36   :  { %214 = vmatpush3.bf16.msra.mxu0 %v233_v7 }
  0x37   :  { %215 = vmatprep.subr.bf16.mxu0 %v283_v0 }
  0x3a   :  { %216 = vmatpush3.bf16.msra.mxu0 %v234_v8 }
  0x3d   :  { %218 = vmatmul.mubr.bf16.vlgmr.msra.gmra.mxu0 %v43_v9 }
  0xfd   :  { %v149_v11 = vpop.f32.mrf.mxu0 }
  0xfe   :  { %v150_v12 = vadd.f32 %v183_v10, %v149_v11 }
  0xff   :  { %v219_v13 = vpop.f32.mrf.mxu0 }
 0x100   :  { %v155_v14 = vpack.c.bf16 %v150_v12, %v150_v12  ;;  %v157_v15 = vrot.slane %v150_v12, 4  ;;  %v163_v16 = vmul.f32 %v150_v12, %v150_v12 }
 0x101   :  { %v152_v17 = vpop.f32.mrf.mxu0 }
 0x102   :  { %156 = vst [vmem:[%s334_s3] sm:$0xf] %v155_v14  ;;  %v158_v18 = vadd.f32 %v157_v15, %v150_v12  ;;  %v164_v19 = vrot.slane %v163_v16, 4 }
 0x103   :  { %v220_v20 = vpop.f32.mrf.mxu0 }
 0x104   :  { %v159_v21 = vrot.slane %v158_v18, 2  ;;  %v165_v22 = vadd.f32 %v164_v19, %v163_v16 }
 0x106   :  { %v160_v23 = vadd.f32 %v159_v21, %v158_v18  ;;  %v166_v24 = vrot.slane %v165_v22, 2 }
 0x108   :  { %v161_v25 = vrot.slane %v160_v23, 1  ;;  %v167_v26 = vadd.f32 %v166_v24, %v165_v22 }
 0x10a   :  { %v162_v27 = vadd.f32 %v161_v25, %v160_v23  ;;  %v168_v28 = vrot.slane %v167_v26, 1 }
 0x10c   :  { %v169_v29 = vadd.f32 %v168_v28, %v167_v26  ;;  %171 = vst [vmem:[%s335_s4] sm:$0x1] %v162_v27 }
 0x10e   :  { %172 = vst [vmem:[%s335_s4 + $0x1] sm:$0x1] %v169_v29 }
 0x10f   :  { %181 = vsyncpa [#allocation3], 1 }
 0x110   :  { %182 = vsyncpa [#allocation5], 1 }

</bundles_post_ra>
